<compile_context>
chip_gen: v7x
topology: tpu7x:2x2x1
jax: 0.10.0
libtpu: 0.0.40
codegen_flags: <defaults>
</compile_context>

<pallas_src>
import jax
import jax.numpy as jnp
from jax import lax
from jax.experimental import pallas as pl
from jax.experimental.pallas import tpu as pltpu


def _make_confusion_kernel(num_classes, tile, hw_total, tiles_per_split):
    C = num_classes

    def kernel(logits_ref, labels_ref, cm_ref):
        p = pl.program_id(0)          # parallel split (TensorCore on v7x)
        n = pl.program_id(1)          # batch image
        t = pl.program_id(2)          # pixel tile within this split

        @pl.when((n == 0) & (t == 0))
        def _():
            cm_ref[...] = jnp.zeros_like(cm_ref)

        x = logits_ref[...].astype(jnp.float32)                  # (C, TILE)
        row = lax.broadcasted_iota(jnp.int32, (C, tile), 0)      # class index rows

        # argmax over classes (sublane axis), first-occurrence semantics.
        m = jnp.max(x, axis=0, keepdims=True)                    # (1, TILE)
        pred = jnp.min(jnp.where(x == m, row, C), axis=0, keepdims=True)  # (1, TILE)

        true = labels_ref[...]                                   # (1, TILE) int32

        # Mask pixels past the end of the image (ragged last tile / clamped
        # overhang tiles of the parallel split).  No HBM padding needed.
        pix_start = (p * tiles_per_split + t) * tile
        lane = lax.broadcasted_iota(jnp.int32, (1, tile), 1)
        valid = (pix_start + lane) < hw_total                    # (1, TILE)

        t_oh = jnp.where((row == true) & valid, 1.0, 0.0).astype(jnp.float32)
        p_oh = jnp.where(row == pred, 1.0, 0.0).astype(jnp.float32)

        # CM[i, j] += #pixels with true==i and pred==j (contract over pixels).
        cm_ref[...] += lax.dot_general(
            t_oh, p_oh,
            dimension_numbers=(((1,), (1,)), ((), ())),
            preferred_element_type=jnp.float32)

    return kernel


def sensitivity_specificity_loss(output, target, weight=0.5, tile_pixels=8192):
    """output: (N, C, H, W) float logits; target: (N, H, W) integer labels."""
    N, C, H, W = output.shape
    HW = H * W

    # Free reshapes (contiguous), no transpose, no pad.
    logits = output.reshape(N, C, HW)
    labels = target.astype(jnp.int32).reshape(N, 1, HW)

    # Lane-aligned tile, capped so one logits block stays around <= 2 MiB.
    max_tile_for_vmem = max(128, ((2 * 1024 * 1024) // (4 * C)) // 128 * 128)
    tile = min(tile_pixels, max_tile_for_vmem)
    if HW <= tile:
        tile = HW                      # single (full-extent) block per image
        num_tiles = 1
    else:
        num_tiles = pl.cdiv(HW, tile)

    # Split the tile range in two for the v7x megacore (no-op on v5e/v6e).
    num_splits = 2 if num_tiles >= 2 else 1
    tiles_per_split = pl.cdiv(num_tiles, num_splits)

    def in_index(p, n, t):
        # Clamp overhang tiles of the split back in range; they are fully
        # masked out inside the kernel via the global pixel index.
        return (n, 0, jnp.minimum(p * tiles_per_split + t, num_tiles - 1))

    cm_parts = pl.pallas_call(
        _make_confusion_kernel(C, tile, HW, tiles_per_split),
        out_shape=jax.ShapeDtypeStruct((num_splits, C, C), jnp.float32),
        grid_spec=pltpu.PrefetchScalarGridSpec(
            num_scalar_prefetch=0,
            grid=(num_splits, N, tiles_per_split),
            in_specs=[
                pl.BlockSpec((None, C, tile), in_index),
                pl.BlockSpec((None, 1, tile), in_index),
            ],
            out_specs=pl.BlockSpec((None, C, C), lambda p, n, t: (p, 0, 0)),
        ),
        compiler_params=pltpu.CompilerParams(
            dimension_semantics=("parallel", "arbitrary", "arbitrary")),
        cost_estimate=pl.CostEstimate(
            flops=2 * N * HW * C * C,
            transcendentals=0,
            bytes_accessed=N * HW * C * 4 + N * HW * 4 + num_splits * C * C * 4),
    )(logits, labels)

    cm = jnp.sum(cm_parts, axis=0)     # (C, C) confusion matrix CM[true, pred]

    # Tiny (C,)-sized epilogue: exact copy of _sensitivity_specificity_loss math.
    sum_along_classified = jnp.sum(cm, axis=1)
    sum_along_actual = jnp.sum(cm, axis=0)
    tp = jnp.diagonal(cm)
    fp = sum_along_classified - tp
    fn = sum_along_actual - tp
    tn = jnp.sum(cm) - tp - fp - fn
    smooth = 1e-6
    sensitivity = (tp + smooth) / (tp + fn + smooth)
    specificity = (tn + smooth) / (tn + fp + smooth)
    return 1.0 - jnp.mean(weight * sensitivity + (1.0 - weight) * specificity)


def _reference_loss(output, target, w=0.5):
    """Pure-JAX reference mirroring the PyTorch module, for sanity checking."""
    Cn = output.shape[1]
    y_pred = jnp.argmax(jax.nn.softmax(output, axis=1), axis=1)
    y_true = target.astype(jnp.int32)
    idx = Cn * y_true.reshape(-1) + y_pred.reshape(-1)
    cm = jnp.bincount(idx, length=Cn * Cn).reshape(Cn, Cn).astype(jnp.float32)
    tp = jnp.diagonal(cm)
    fp = jnp.sum(cm, axis=1) - tp
    fn = jnp.sum(cm, axis=0) - tp
    tn = jnp.sum(cm) - tp - fp - fn
    s = 1e-6
    sens = (tp + s) / (tp + fn + s)
    spec = (tn + s) / (tn + fp + s)
    return 1.0 - jnp.mean(w * sens + (1 - w) * spec)


if __name__ == "__main__":
    key = jax.random.PRNGKey(0)
    k1, k2 = jax.random.split(key)
    N, C, H, W = 2, 4, 16, 16
    logits = jax.random.normal(k1, (N, C, H, W), dtype=jnp.float32)
    target = jax.random.randint(k2, (N, H, W), 0, C, dtype=jnp.int32)

    loss = jax.jit(sensitivity_specificity_loss)(logits, target)
    loss = jax.block_until_ready(loss)

    ref = _reference_loss(logits, target)
    assert jnp.allclose(loss, ref, atol=1e-5), (loss, ref)
    print("KERNEL_OK")
</pallas_src>

<mosaic_0001>
module attributes {stable_mosaic.version = 11 : i64} {
  func.func @kernel(%arg0: i32, %arg1: i32, %arg2: i32, %arg3: memref<1x4x256xf32, #tpu.memory_space<vmem>>, %arg4: memref<1x1x256xi32, #tpu.memory_space<vmem>>, %arg5: memref<1x4x4xf32, #tpu.memory_space<vmem>>) attributes {dimension_semantics = [#tpu.dimension_semantics<parallel>, #tpu.dimension_semantics<arbitrary>, #tpu.dimension_semantics<arbitrary>], iteration_bounds = array<i64: 1, 2, 1>, scalar_prefetch = 0 : i64, scratch_operands = 0 : i64, tpu.core_type = #tpu.core_type<tc>, window_params = [{transform_indices = @transform_0, window_bounds = array<i64: 1, 4, 256>}, {transform_indices = @transform_1, window_bounds = array<i64: 1, 1, 256>}, {transform_indices = @transform_2, window_bounds = array<i64: 1, 4, 4>}]} {
    %c0_i32 = arith.constant 0 : i32
    %0 = arith.cmpi eq, %arg1, %c0_i32 : i32
    %c0_i32_0 = arith.constant 0 : i32
    %1 = arith.cmpi eq, %arg2, %c0_i32_0 : i32
    %2 = arith.andi %0, %1 : i1
    %3 = arith.extui %2 : i1 to i32
    %c0_i32_1 = arith.constant 0 : i32
    %4 = arith.cmpi ne, %3, %c0_i32_1 : i32
    scf.if %4 {
      %cst_20 = arith.constant 0.000000e+00 : f32
      %45 = vector.broadcast %cst_20 : f32 to vector<4x4xf32>
      %c0_21 = arith.constant 0 : index
      %c0_22 = arith.constant 0 : index
      %c0_23 = arith.constant 0 : index
      %46 = vector.load %arg5[%c0_21, %c0_22, %c0_23] : memref<1x4x4xf32, #tpu.memory_space<vmem>>, vector<1x4x4xf32>
      %47 = vector.shape_cast %46 : vector<1x4x4xf32> to vector<4x4xf32>
      %48 = vector.shape_cast %45 : vector<4x4xf32> to vector<1x4x4xf32>
      tpu.vector_store %arg5[%c0_21, %c0_22, %c0_23], %48 {strides = array<i32>} : memref<1x4x4xf32, #tpu.memory_space<vmem>>, vector<1x4x4xf32>,
    } else {
    }
    %c0 = arith.constant 0 : index
    %c0_2 = arith.constant 0 : index
    %c0_3 = arith.constant 0 : index
    %5 = vector.load %arg3[%c0, %c0_2, %c0_3] : memref<1x4x256xf32, #tpu.memory_space<vmem>>, vector<1x4x256xf32>
    %6 = vector.shape_cast %5 : vector<1x4x256xf32> to vector<4x256xf32>
    %7 = tpu.iota {dimensions = array<i32: 0>} : vector<4x256xi32>
    %cst = arith.constant dense<0xFF800000> : vector<256xf32>
    %8 = vector.multi_reduction <maximumf>, %6, %cst [0] : vector<4x256xf32> to vector<256xf32>
    %9 = vector.shape_cast %8 : vector<256xf32> to vector<1x256xf32>
    %10 = vector.broadcast %9 : vector<1x256xf32> to vector<4x256xf32>
    %11 = arith.cmpf oeq, %6, %10 : vector<4x256xf32>
    %c4_i32 = arith.constant 4 : i32
    %12 = vector.broadcast %c4_i32 : i32 to vector<4x256xi32>
    %13 = arith.select %11, %7, %12 : vector<4x256xi1>, vector<4x256xi32>
    %cst_4 = arith.constant dense<2147483647> : vector<256xi32>
    %14 = vector.multi_reduction <minsi>, %13, %cst_4 [0] : vector<4x256xi32> to vector<256xi32>
    %15 = vector.shape_cast %14 : vector<256xi32> to vector<1x256xi32>
    %c0_5 = arith.constant 0 : index
    %c0_6 = arith.constant 0 : index
    %c0_7 = arith.constant 0 : index
    %16 = vector.load %arg4[%c0_5, %c0_6, %c0_7] : memref<1x1x256xi32, #tpu.memory_space<vmem>>, vector<1x1x256xi32>
    %17 = vector.shape_cast %16 : vector<1x1x256xi32> to vector<1x256xi32>
    %c1_i32 = arith.constant 1 : i32
    %18 = arith.muli %arg0, %c1_i32 : i32
    %19 = arith.addi %18, %arg2 : i32
    %c256_i32 = arith.constant 256 : i32
    %20 = arith.muli %19, %c256_i32 : i32
    %21 = tpu.iota {dimensions = array<i32: 1>} : vector<1x256xi32>
    %22 = vector.broadcast %20 : i32 to vector<1x256xi32>
    %23 = arith.addi %22, %21 : vector<1x256xi32>
    %c256_i32_8 = arith.constant 256 : i32
    %24 = vector.broadcast %c256_i32_8 : i32 to vector<1x256xi32>
    %25 = arith.cmpi slt, %23, %24 : vector<1x256xi32>
    %26 = vector.broadcast %17 : vector<1x256xi32> to vector<4x256xi32>
    %27 = arith.cmpi eq, %7, %26 : vector<4x256xi32>
    %28 = vector.broadcast %25 : vector<1x256xi1> to vector<4x256xi1>
    %29 = arith.andi %27, %28 : vector<4x256xi1>
    %cst_9 = arith.constant 1.000000e+00 : f32
    %cst_10 = arith.constant 0.000000e+00 : f32
    %30 = vector.broadcast %cst_9 : f32 to vector<4x256xf32>
    %31 = vector.broadcast %cst_10 : f32 to vector<4x256xf32>
    %32 = arith.select %29, %30, %31 : vector<4x256xi1>, vector<4x256xf32>
    %33 = vector.broadcast %15 : vector<1x256xi32> to vector<4x256xi32>
    %34 = arith.cmpi eq, %7, %33 : vector<4x256xi32>
    %cst_11 = arith.constant 1.000000e+00 : f32
    %cst_12 = arith.constant 0.000000e+00 : f32
    %35 = vector.broadcast %cst_11 : f32 to vector<4x256xf32>
    %36 = vector.broadcast %cst_12 : f32 to vector<4x256xf32>
    %37 = arith.select %34, %35, %36 : vector<4x256xi1>, vector<4x256xf32>
    %c0_13 = arith.constant 0 : index
    %c0_14 = arith.constant 0 : index
    %c0_15 = arith.constant 0 : index
    %38 = vector.load %arg5[%c0_13, %c0_14, %c0_15] : memref<1x4x4xf32, #tpu.memory_space<vmem>>, vector<1x4x4xf32>
    %39 = vector.shape_cast %38 : vector<1x4x4xf32> to vector<4x4xf32>
    %cst_16 = arith.constant dense<0.000000e+00> : vector<4x4xf32>
    %40 = tpu.matmul %32, %37, %cst_16 {dimension_numbers = #tpu.dot_dimension_numbers<[1], [1], [0], [0], [0, 0, 1, 0], [], []>} : vector<4x256xf32>, vector<4x256xf32>, vector<4x4xf32> -> vector<4x4xf32>
    %41 = arith.addf %39, %40 : vector<4x4xf32>
    %c0_17 = arith.constant 0 : index
    %c0_18 = arith.constant 0 : index
    %c0_19 = arith.constant 0 : index
    %42 = vector.load %arg5[%c0_17, %c0_18, %c0_19] : memref<1x4x4xf32, #tpu.memory_space<vmem>>, vector<1x4x4xf32>
    %43 = vector.shape_cast %42 : vector<1x4x4xf32> to vector<4x4xf32>
    %44 = vector.shape_cast %41 : vector<4x4xf32> to vector<1x4x4xf32>
    tpu.vector_store %arg5[%c0_17, %c0_18, %c0_19], %44 {strides = array<i32>} : memref<1x4x4xf32, #tpu.memory_space<vmem>>, vector<1x4x4xf32>,
    return
  }
  func.func @transform_0(%arg0: i32, %arg1: i32, %arg2: i32) -> (i32, i32, i32) {
    %c1_i32 = arith.constant 1 : i32
    %0 = arith.muli %arg0, %c1_i32 : i32
    %1 = arith.addi %0, %arg2 : i32
    %c0_i32 = arith.constant 0 : i32
    %2 = arith.minsi %1, %c0_i32 : i32
    %c0_i32_0 = arith.constant 0 : i32
    %c0_i32_1 = arith.constant 0 : i32
    return %arg1, %c0_i32_0, %2 : i32, i32, i32
  }
  func.func @transform_1(%arg0: i32, %arg1: i32, %arg2: i32) -> (i32, i32, i32) {
    %c1_i32 = arith.constant 1 : i32
    %0 = arith.muli %arg0, %c1_i32 : i32
    %1 = arith.addi %0, %arg2 : i32
    %c0_i32 = arith.constant 0 : i32
    %2 = arith.minsi %1, %c0_i32 : i32
    %c0_i32_0 = arith.constant 0 : i32
    %c0_i32_1 = arith.constant 0 : i32
    return %arg1, %c0_i32_0, %2 : i32, i32, i32
  }
  func.func @transform_2(%arg0: i32, %arg1: i32, %arg2: i32) -> (i32, i32, i32) {
    %c0_i32 = arith.constant 0 : i32
    %c0_i32_0 = arith.constant 0 : i32
    %c0_i32_1 = arith.constant 0 : i32
    return %arg0, %c0_i32, %c0_i32_0 : i32, i32, i32
  }
}

</mosaic_0001>

<bundles_post_ra>
// kernel: sensitivity_specificity_loss.1
= control target key start
LH: loop header
LB: loop body
LE: loop exit
PB: predicated region body
PF: predicated region fallthrough
CT: control target
= control target key end

     0   :  { %s592_s9 = smov 0   ;;  %s594_s10 = smov 0   ;;  %s638_s0 = inlined_call_operand.vmem [shape: f32[2,4,256], index: 0, kind: input, shape index: {}]   ;;  %s639_s1 = inlined_call_operand.vmem [shape: s32[2,1,256], index: 1, kind: input, shape index: {}]   ;;  %s640_s2 = inlined_call_operand.vmem [shape: f32[1,4,4], index: 2, kind: output, shape index: {}]  }
   0x1   :  { %s596_s11 = smov 0  }
   0x2 LB: > { %s27_s12 = sadd.s32 1, %s568_s10  ;;  %p508_p0 = scmp.ge.s32.totalorder %s572_s11, 1  ;;  %s572_s11 = sphi %s596_s11, %s12_s11   ;;  %s568_s10 = sphi %s594_s10, %s642_s10   ;;  %s564_s9 = sphi %s592_s9, %s641_s9  }
   0x3   : > { %p29_p1 = scmp.ge.s32.totalorder %s27_s12, 2  ;;  %p178_p2 = scmp.lt.s32.totalorder %s572_s11, 3 }
   0x5   : > { %s644_s12 = smov (%p29_p1, %s27_s12), 0  ;;  %p179_p3 = pnand %p508_p0, %p178_p2 }
   0x6   : > { %p221_p4 = scmp.lt.s32.totalorder (!%p179_p3), %s564_s9, 1  ;;  %p252_p5 = scmp.eq.s32.totalorder (!%p179_p3), %s564_s9, 0 }
   0x7   : > { %182 = sbr.rel (%p179_p3) target bundleno = 276 (0x114), region = 28 }
   0xe   : > { %s646_s9 = smov (!%p221_p4, %s564_s9), 1  ;;  %257 = sbr.rel (!%p252_p5) target bundleno = 21 (0x15), region = 32 }
   0xf   : > { %s520_s13 = sshll.u32 %s646_s9, 3  ;;  %s511_s14 = sshll.u32 %s646_s9, 1  ;;  %vm258_vm0 = vcmask (%p252_p5), 27648   ;;  %v574_v0 = vmov (%p252_p5), 0.0  }
  0x10   : > { %s228_s17 = scalar_lea.vmem %s638_s0, %s520_s13  ;;  %s243_s20 = scalar_lea.vmem %s639_s1, %s511_s14  ;;  %259 = vst.msk [vmem:[%s640_s2] sm:$0xf] (%p252_p5), %vm258_vm0, %v574_v0 }
  0x15 PF: > { %v260_v1 = vld [vmem:[%s228_s17] sm:$0xff]  ;;  %v261_v2 = vlaneseq  ;;  %vm266_vm1 = vcmask 1043456   ;;  %v575_v8 = vmov 839922192   ;;  %v576_v20 = vmov 1.0  }
  0x16   : > { %v264_v3 = vcombine.high %v260_v1, %v260_v1  ;;  %v267_v4 = vsel %vm266_vm1, %v260_v1, -inf  ;;  %v287_v9 = vunpack.c.l.s4 %v575_v8  ;;  %v315_v10 = vld [vmem:[%s243_s20] sm:$0x3]  ;;  %vm420_vm13 = vcmask 27648  }
  0x17   : > { %v262_v5 = vshrl.u32 %v261_v2, 7  ;;  %v268_v6 = vrot.slane %v267_v4, 4  ;;  %v348_v47 = vld [vmem:[%s640_s2] sm:$0xf] }
  0x18   : > { %v274_v7 = vsel %vm266_vm1, %v264_v3, -inf  ;;  %v288_v17 = vunpack.c.0.s8 %v287_v9 }
  0x19   : > { %v269_v11 = vmax.f32 %v267_v4, %v268_v6  ;;  %v275_v12 = vrot.slane %v274_v7, 4  ;;  %v332_v13 = vsub.s32 1, %v262_v5  ;;  %v328_v41 = vsub.s32 0, %v262_v5 }
  0x1a   : > { %v291_v23 = vsub.s32 %v288_v17, %v262_v5 }
  0x1b   : > { %v270_v14 = vrot.slane %v269_v11, 2  ;;  %v276_v15 = vmax.f32 %v274_v7, %v275_v12  ;;  %v333_v16 = vrot.slane %v315_v10, %v332_v13  ;;  %v329_v45 = vrot.slane %v315_v10, %v328_v41 }
  0x1c   : > { %v292_v27 = vrot.slane %v262_v5, %v291_v23 }
  0x1d   : > { %v271_v18 = vmax.f32 %v269_v11, %v270_v14  ;;  %v277_v19 = vrot.slane %v276_v15, 2  ;;  %vm335_vm2 = vcmp.eq.s32.totalorder %v262_v5, %v333_v16  ;;  %vm334_vm12 = vcmp.eq.s32.totalorder %v262_v5, %v329_v45 }
  0x1e   : > { %515 = vmatprep.mubr.msk.f32.mxu0 %vm335_vm2, %v576_v20 }
  0x1f   : > { %v272_v21 = vrot.slane %v271_v18, 1  ;;  %v278_v22 = vmax.f32 %v276_v15, %v277_v19 }
  0x21   : > { %v273_v24 = vmax.f32 %v271_v18, %v272_v21  ;;  %v279_v25 = vrot.slane %v278_v22, 1 }
  0x23   : > { %v280_v26 = vmax.f32 %v278_v22, %v279_v25 }
  0x25   : > { %v283_v28 = vcombine.low %v273_v24, %v280_v26 }
  0x27   : > { %vm285_vm3 = vcmp.eq.f32.partialorder %v260_v1, %v283_v28 }
  0x28   : > { %v293_v29 = vsel %vm285_vm3, %v292_v27, 4 }
  0x29   : > { %v294_v30 = vcombine.high %v293_v29, %v293_v29  ;;  %v295_v31 = vsel %vm266_vm1, %v293_v29, 2147483647 }
  0x2a   : > { %v296_v32 = vrot.slane %v295_v31, 4 }
  0x2b   : > { %v305_v33 = vsel %vm266_vm1, %v294_v30, 2147483647 }
  0x2c   : > { %v306_v34 = vrot.slane %v305_v33, 4  ;;  %vm297_vm4 = vcmp.lt.s32.totalorder %v295_v31, %v296_v32 }
  0x2d   : > { %v298_v35 = vsel %vm297_vm4, %v295_v31, %v296_v32 }
  0x2e   : > { %vm307_vm5 = vcmp.lt.s32.totalorder %v305_v33, %v306_v34  ;;  %v299_v36 = vrot.slane %v298_v35, 2 }
  0x2f   : > { %v308_v37 = vsel %vm307_vm5, %v305_v33, %v306_v34 }
  0x30   : > { %v309_v38 = vrot.slane %v308_v37, 2  ;;  %vm300_vm6 = vcmp.lt.s32.totalorder %v298_v35, %v299_v36 }
  0x31   : > { %v301_v39 = vsel %vm300_vm6, %v298_v35, %v299_v36 }
  0x32   : > { %vm310_vm7 = vcmp.lt.s32.totalorder %v308_v37, %v309_v38  ;;  %v302_v40 = vrot.slane %v301_v39, 1 }
  0x33   : > { %v311_v42 = vsel %vm310_vm7, %v308_v37, %v309_v38 }
  0x34   : > { %v312_v43 = vrot.slane %v311_v42, 1  ;;  %vm303_vm8 = vcmp.lt.s32.totalorder %v301_v39, %v302_v40 }
  0x35   : > { %v304_v44 = vsel %vm303_vm8, %v301_v39, %v302_v40 }
  0x36   : > { %vm313_vm9 = vcmp.lt.s32.totalorder %v311_v42, %v312_v43  ;;  %vm344_vm10 = vcmp.eq.s32.totalorder %v262_v5, %v304_v44 }
  0x37   : > { %v314_v46 = vsel %vm313_vm9, %v311_v42, %v312_v43 }
  0x38   : > { %vm345_vm11 = vcmp.eq.s32.totalorder %v262_v5, %v314_v46 }
  0x39   : > { %513 = vmatprep.subr.msk.mxu0 %vm345_vm11, %v576_v20 }
  0x3a   : > { %514 = vmatpush1.xpose.msk.msra.mxu0 %vm344_vm10, %v576_v20 }
  0x3d   : > { %516 = vmatmul.mubr.msk.f32.vlgmr.msra.gmra.mrb[0].mxu0 %vm334_vm12, %v576_v20 }
 0x110   : > { %v415_v48 = vpop.f32.mrb[0].mxu0 }
 0x111   : > { %v419_v49 = vadd.f32 %v415_v48, %v348_v47  ;;  %v417_v50 = vpop.f32.mrb[1].mxu0 }
 0x113   : > { %421 = vst.msk [vmem:[%s640_s2] sm:$0xf] %vm420_vm13, %v419_v49 }
 0x114 PF: > { %s12_s11 = sadd.s32 1, %s572_s11   ;;  %s641_s9 = smov %s568_s10 }
 0x115   : > { %p9_p6 = scmp.ge.s32.totalorder %s12_s11, 4   ;;  %s642_s10 = smov %s644_s12 }
 0x117   :  { %11 = sbr.rel (!%p9_p6) target bundleno = 2 (0x2), region = 65 }

</bundles_post_ra>
